<compile_context>
chip_gen: v7x
topology: tpu7x:2x2x1
jax: 0.10.0
libtpu: 0.0.40
codegen_flags: <defaults>
</compile_context>

<pallas_src>
import jax
import jax.numpy as jnp
import numpy as np
from jax.experimental import pallas as pl
from jax.experimental.pallas import tpu as pltpu

INF = 1.0 * 1000000000000.0  # matches the PyTorch module's constant


def _round_up(x, m):
    return ((x + m - 1) // m) * m


# ------------------------------- kernels ------------------------------------

def _word_att_body(x_ref, wt_ref, b_ref, u_ref, xw_ref, aw_ref, mask):
    """One grid step = TB batch elements."""
    TB, S, F = x_ref.shape
    A = wt_ref.shape[1]

    x = x_ref[...]                               # (TB, S, F) native dtype (MXU-fed as-is)
    x2 = x.reshape(TB * S, F)                    # no-op view: wrapper guarantees S % 8 == 0

    # word_att linear + tanh: one big (TB*S, F)@(F, A) MXU matmul, f32 accumulation
    att = jnp.tanh(
        jnp.dot(x2, wt_ref[...], preferred_element_type=jnp.float32)
        + b_ref[...].astype(jnp.float32))        # (TB*S, A) f32

    # word_context_vector: VPU multiply + lane reduce (avoids an N=1 MXU matmul)
    u = u_ref[...].astype(jnp.float32).reshape(1, 1, A)
    score = jnp.sum(att.reshape(TB, S, A) * u, axis=-1)      # (TB, S), S lane-dense

    if mask is not None:                         # specialized away when mask is None
        score = score * mask + (-INF) * (1.0 - mask)

    # softmax over the sequence (lane) axis, f32 throughout; exact reciprocal
    # kept to stay well inside the comparison tolerance.
    score = score - jnp.max(score, axis=-1, keepdims=True)
    e = jnp.exp(score)
    weight = e / jnp.sum(e, axis=-1, keepdims=True)          # (TB, S) f32

    # weighted sum over the sequence: f32 VPU broadcast-multiply + sublane reduce
    # (TB tiny (1,S)@(S,F) MXU matmuls would waste the MXU; this hides under DMA)
    xw = jnp.sum(x.astype(jnp.float32) * weight[:, :, None], axis=1)   # (TB, F) f32

    xw_ref[...] = xw.astype(xw_ref.dtype)        # (TB, F)
    aw_ref[...] = weight.astype(aw_ref.dtype)    # (TB, S) lane-dense


def word_att_kernel_masked(x_ref, m_ref, wt_ref, b_ref, u_ref, xw_ref, aw_ref):
    _word_att_body(x_ref, wt_ref, b_ref, u_ref, xw_ref, aw_ref,
                   mask=m_ref[...].astype(jnp.float32))


def word_att_kernel_nomask(x_ref, wt_ref, b_ref, u_ref, xw_ref, aw_ref):
    _word_att_body(x_ref, wt_ref, b_ref, u_ref, xw_ref, aw_ref, mask=None)


# ------------------------ tiling / VMEM accounting ---------------------------

def _vmem_per_step_bytes(tb, S, F, A, in_isz, out_isz, masked):
    """Conservative per-grid-step VMEM footprint (lane/sublane padded)."""
    tb8 = _round_up(max(tb, 1), 8)
    S8 = _round_up(S, 8)
    Sl, Al, Fl = _round_up(S, 128), _round_up(A, 128), _round_up(F, 128)
    b = 0
    b += 2 * tb * S8 * Fl * in_isz          # input tile (double-buffered)
    if masked:
        b += 2 * tb8 * Sl * 4               # f32 mask tile (double-buffered)
    b += 2 * tb8 * Fl * out_isz             # x_weighted output (double-buffered)
    b += 2 * tb8 * Sl * 4                   # att_weight output (double-buffered)
    b += tb * S8 * Al * 4                   # f32 att = tanh(x@W^T+b), lane-padded to 128
    b += tb * S8 * Fl * 4                   # f32 x*weight product before sublane reduce
    b += 6 * tb8 * Sl * 4                   # score / exp / weight / softmax temps
    return b


def _vmem_fixed_bytes(F, A, in_isz):
    """Replicated operands (W^T, bias, u) — double-buffered by the pipeline."""
    return 2 * (_round_up(F, 8) * _round_up(A, 128) * in_isz
                + 2 * _round_up(A, 128) * 4)


def _num_tensorcores_per_chip():
    """Best-effort: dual-TC chips (v7x) want the grid split across cores."""
    try:
        kind = jax.devices()[0].device_kind.lower()
        if "v7" in kind:
            return 2
    except Exception:
        pass
    return 1


def _choose_tb(B, S, F, A, in_isz, out_isz, masked, n_tc):
    """Batch-tile size.

    (a) VMEM cap: per-step working set <= ~6 MiB (full accounting above), so we
        stay comfortably inside v5e's 16 MiB scoped default and v7x's VMEM.
    (b) Pipeline-depth cap: once the batch is big enough to need tiling, keep
        >= 4 grid steps (>= 8 on dual-TC chips, i.e. >= 4 per core) so tile DMA
        overlaps compute; tiny batches stay single-step (no overhead).
    tb is always either the full batch or a multiple of 8, so every 2-D block
    respects the (8,128) rule and ragged final blocks are legal.
    """
    budget = 6 << 20
    per8 = _vmem_per_step_bytes(8, S, F, A, in_isz, out_isz, masked)
    tb_cap = max(8, (((budget * 8) // max(per8, 1)) // 8) * 8)

    steps = 8 if n_tc >= 2 else 4
    if B >= 8 * steps:
        tb_cap = min(tb_cap, _round_up(-(-B // steps), 8))
    elif n_tc >= 2 and B >= 16:
        tb_cap = min(tb_cap, _round_up(-(-B // 2), 8))   # give both TCs work

    tb = min(B, tb_cap)
    if tb < B:
        tb = max(8, (tb // 8) * 8)
    return int(max(1, tb))


# -------------------------------- wrapper ------------------------------------

def word_att_v1(inputs, mask, w_att, b_att, u_ctx):
    """inputs: (B, S, F); mask: (B, S) / (B, S, 1) / None; w_att: (A, F);
    b_att: (A,); u_ctx: (1, A).  Returns (x_weighted (B, F), att_weight (B, S, 1))."""
    B, S, F = inputs.shape
    A = w_att.shape[0]
    in_dt = inputs.dtype

    # Sequence-axis alignment: keep in-kernel reshapes tile-aligned views.
    # (One-time pad, only when S % 8 != 0; padded positions are masked to -INF
    #  so softmax / weighted-sum semantics are unchanged.)
    Sp = _round_up(S, 8)
    if Sp != S:
        inputs_k = jnp.pad(inputs, ((0, 0), (0, Sp - S), (0, 0)))
        valid = jnp.concatenate(
            [jnp.ones((B, S), jnp.float32), jnp.zeros((B, Sp - S), jnp.float32)], axis=1)
        if mask is None:
            mask_k = valid
        else:
            mask_k = jnp.pad(mask.astype(jnp.float32).reshape(B, S),
                             ((0, 0), (0, Sp - S)))
    else:
        inputs_k = inputs
        # TODO(synk): could pass a user-supplied mask as int8 to shave B*S*3 bytes of
        # DMA, but it is ~1/F of the input traffic; kept f32 for simplicity.
        mask_k = None if mask is None else mask.astype(jnp.float32).reshape(B, S)

    masked = mask_k is not None
    in_isz = inputs.dtype.itemsize
    n_tc = _num_tensorcores_per_chip()
    tb = _choose_tb(B, Sp, F, A, in_isz, in_isz, masked, n_tc)
    grid_b = pl.cdiv(B, tb)          # ragged last block handled by Pallas (no jnp.pad)

    need = (_vmem_per_step_bytes(tb, Sp, F, A, in_isz, in_isz, masked)
            + _vmem_fixed_bytes(F, A, in_isz))
    vmem_limit = int(min(32 << 20, max(16 << 20, need + need // 4 + (2 << 20))))

    w_t = jnp.transpose(w_att).astype(in_dt)          # (F, A) == W_att^T
    b = b_att.reshape(1, A).astype(jnp.float32)       # (1, A)
    u = u_ctx.reshape(1, A).astype(jnp.float32)       # (1, A)

    x_spec = pl.BlockSpec((tb, Sp, F), lambda i: (i, 0, 0))
    m_spec = pl.BlockSpec((tb, Sp), lambda i: (i, 0))
    w_spec = pl.BlockSpec((F, A), lambda i: (0, 0))
    b_spec = pl.BlockSpec((1, A), lambda i: (0, 0))
    u_spec = pl.BlockSpec((1, A), lambda i: (0, 0))
    out_specs = [pl.BlockSpec((tb, F), lambda i: (i, 0)),
                 pl.BlockSpec((tb, Sp), lambda i: (i, 0))]
    out_shapes = (jax.ShapeDtypeStruct((B, F), in_dt),       # x_weighted
                  jax.ShapeDtypeStruct((B, Sp), jnp.float32))  # att_weight, lane-dense

    if masked:
        kernel = word_att_kernel_masked
        in_specs = [x_spec, m_spec, w_spec, b_spec, u_spec]
        args = (inputs_k, mask_k, w_t, b, u)
    else:
        kernel = word_att_kernel_nomask
        in_specs = [x_spec, w_spec, b_spec, u_spec]
        args = (inputs_k, w_t, b, u)

    grid_spec = pltpu.PrefetchScalarGridSpec(
        num_scalar_prefetch=0,
        grid=(grid_b,),
        in_specs=in_specs,
        out_specs=out_specs,
    )

    x_w, att_w = pl.pallas_call(
        kernel,
        out_shape=out_shapes,
        grid_spec=grid_spec,
        compiler_params=pltpu.CompilerParams(
            dimension_semantics=("parallel",),
            vmem_limit_bytes=vmem_limit),
    )(*args)

    # restore the module's (B, S, 1) att_weight shape (drop the S padding if any)
    return x_w, att_w[:, :S].reshape(B, S, 1)


# ------------------------------- reference -----------------------------------

def word_att_v1_ref(inputs, mask, w_att, b_att, u_ctx):
    """Pure-JAX reference matching the PyTorch forward."""
    att = jnp.tanh(jnp.einsum('bsf,af->bsa', inputs, w_att) + b_att)
    score = jnp.einsum('bsa,oa->bso', att, u_ctx)              # (B, S, 1)
    if mask is not None:
        m = mask.astype(jnp.float32).reshape(inputs.shape[0], inputs.shape[1], 1)
        score = score * m + (-INF) * (1.0 - m)
    weight = jax.nn.softmax(score, axis=1)
    x_weighted = jnp.sum(inputs * weight, axis=1)
    return x_weighted, weight


if __name__ == "__main__":
    # Shapes consistent with the module: batch=2, seq=8, fea_size=32, attention_size=16
    B, S, F, A = 2, 8, 32, 16
    key = jax.random.PRNGKey(0)
    k1, k2, k3, k4, k5 = jax.random.split(key, 5)

    inputs = jax.random.normal(k1, (B, S, F), dtype=jnp.float32)
    mask = (jax.random.uniform(k2, (B, S)) > 0.2).astype(jnp.float32)
    mask = mask.at[:, 0].set(1.0)  # at least one valid position per row

    w_att = jax.random.normal(k3, (A, F), dtype=jnp.float32) * 0.1   # word_att.weight
    b_att = jax.random.normal(k4, (A,), dtype=jnp.float32) * 0.1     # word_att.bias
    u_ctx = jax.random.normal(k5, (1, A), dtype=jnp.float32) * 0.1   # word_context_vector.weight

    # 1) masked path
    x_w, att_w = word_att_v1(inputs, mask, w_att, b_att, u_ctx)
    jax.block_until_ready((x_w, att_w))
    x_w_r, att_w_r = word_att_v1_ref(inputs, mask, w_att, b_att, u_ctx)
    assert np.allclose(np.asarray(x_w), np.asarray(x_w_r), atol=1e-4, rtol=1e-4)
    assert np.allclose(np.asarray(att_w), np.asarray(att_w_r), atol=1e-4, rtol=1e-4)

    # 2) mask=None path (specialized kernel with no mask operand)
    x_w2, att_w2 = word_att_v1(inputs, None, w_att, b_att, u_ctx)
    jax.block_until_ready((x_w2, att_w2))
    x_w2_r, att_w2_r = word_att_v1_ref(inputs, None, w_att, b_att, u_ctx)
    assert np.allclose(np.asarray(x_w2), np.asarray(x_w2_r), atol=1e-4, rtol=1e-4)
    assert np.allclose(np.asarray(att_w2), np.asarray(att_w2_r), atol=1e-4, rtol=1e-4)

    # 3) unaligned sequence length (S % 8 != 0): exercises the one-time S pad + mask conversion
    S3 = 10
    inputs3 = jax.random.normal(k1, (B, S3, F), dtype=jnp.float32)
    x_w3, att_w3 = word_att_v1(inputs3, None, w_att, b_att, u_ctx)
    jax.block_until_ready((x_w3, att_w3))
    x_w3_r, att_w3_r = word_att_v1_ref(inputs3, None, w_att, b_att, u_ctx)
    assert np.allclose(np.asarray(x_w3), np.asarray(x_w3_r), atol=1e-4, rtol=1e-4)
    assert np.allclose(np.asarray(att_w3), np.asarray(att_w3_r), atol=1e-4, rtol=1e-4)

    print("KERNEL_OK")
</pallas_src>

<mosaic_0001>
module attributes {stable_mosaic.version = 11 : i64} {
  func.func @word_att_kernel_masked(%arg0: i32, %arg1: memref<2x8x32xf32, #tpu.memory_space<vmem>>, %arg2: memref<2x8xf32, #tpu.memory_space<vmem>>, %arg3: memref<32x16xf32, #tpu.memory_space<vmem>>, %arg4: memref<1x16xf32, #tpu.memory_space<vmem>>, %arg5: memref<1x16xf32, #tpu.memory_space<vmem>>, %arg6: memref<2x32xf32, #tpu.memory_space<vmem>>, %arg7: memref<2x8xf32, #tpu.memory_space<vmem>>) attributes {dimension_semantics = [#tpu.dimension_semantics<parallel>], iteration_bounds = array<i64: 1>, scalar_prefetch = 0 : i64, scratch_operands = 0 : i64, tpu.core_type = #tpu.core_type<tc>, window_params = [{transform_indices = @transform_0, window_bounds = array<i64: 2, 8, 32>}, {transform_indices = @transform_1, window_bounds = array<i64: 2, 8>}, {pipeline_mode = #tpu.pipeline_mode<synchronous>, transform_indices = @transform_2, window_bounds = array<i64: 32, 16>}, {pipeline_mode = #tpu.pipeline_mode<synchronous>, transform_indices = @transform_3, window_bounds = array<i64: 1, 16>}, {pipeline_mode = #tpu.pipeline_mode<synchronous>, transform_indices = @transform_4, window_bounds = array<i64: 1, 16>}, {transform_indices = @transform_5, window_bounds = array<i64: 2, 32>}, {transform_indices = @transform_6, window_bounds = array<i64: 2, 8>}]} {
    %c0 = arith.constant 0 : index
    %c0_0 = arith.constant 0 : index
    %0 = vector.load %arg2[%c0, %c0_0] : memref<2x8xf32, #tpu.memory_space<vmem>>, vector<2x8xf32>
    %c0_1 = arith.constant 0 : index
    %c0_2 = arith.constant 0 : index
    %c0_3 = arith.constant 0 : index
    %1 = vector.load %arg1[%c0_1, %c0_2, %c0_3] : memref<2x8x32xf32, #tpu.memory_space<vmem>>, vector<2x8x32xf32>
    %2 = vector.shape_cast %1 : vector<2x8x32xf32> to vector<16x32xf32>
    %c0_4 = arith.constant 0 : index
    %c0_5 = arith.constant 0 : index
    %3 = vector.load %arg3[%c0_4, %c0_5] : memref<32x16xf32, #tpu.memory_space<vmem>>, vector<32x16xf32>
    %cst = arith.constant dense<0.000000e+00> : vector<16x16xf32>
    %4 = tpu.matmul %2, %3, %cst {dimension_numbers = #tpu.dot_dimension_numbers<[1], [0], [0], [1], [0, 0, 1, 1], [], []>} : vector<16x32xf32>, vector<32x16xf32>, vector<16x16xf32> -> vector<16x16xf32>
    %c0_6 = arith.constant 0 : index
    %c0_7 = arith.constant 0 : index
    %5 = vector.load %arg4[%c0_6, %c0_7] : memref<1x16xf32, #tpu.memory_space<vmem>>, vector<1x16xf32>
    %6 = vector.broadcast %5 : vector<1x16xf32> to vector<16x16xf32>
    %7 = arith.addf %4, %6 : vector<16x16xf32>
    %8 = math.tanh %7 : vector<16x16xf32>
    %c0_8 = arith.constant 0 : index
    %c0_9 = arith.constant 0 : index
    %9 = vector.load %arg5[%c0_8, %c0_9] : memref<1x16xf32, #tpu.memory_space<vmem>>, vector<1x16xf32>
    %10 = vector.shape_cast %9 : vector<1x16xf32> to vector<1x1x16xf32>
    %11 = vector.shape_cast %8 : vector<16x16xf32> to vector<2x8x16xf32>
    %12 = vector.broadcast %10 : vector<1x1x16xf32> to vector<2x8x16xf32>
    %13 = arith.mulf %11, %12 : vector<2x8x16xf32>
    %cst_10 = arith.constant dense<0.000000e+00> : vector<2x8xf32>
    %14 = vector.multi_reduction <add>, %13, %cst_10 [2] : vector<2x8x16xf32> to vector<2x8xf32>
    %15 = arith.mulf %14, %0 : vector<2x8xf32>
    %cst_11 = arith.constant 1.000000e+00 : f32
    %16 = vector.broadcast %cst_11 : f32 to vector<2x8xf32>
    %17 = arith.subf %16, %0 : vector<2x8xf32>
    %cst_12 = arith.constant -9.99999995E+11 : f32
    %18 = vector.broadcast %cst_12 : f32 to vector<2x8xf32>
    %19 = arith.mulf %18, %17 : vector<2x8xf32>
    %20 = arith.addf %15, %19 : vector<2x8xf32>
    %cst_13 = arith.constant dense<0xFF800000> : vector<2xf32>
    %21 = vector.multi_reduction <maximumf>, %20, %cst_13 [1] : vector<2x8xf32> to vector<2xf32>
    %22 = vector.shape_cast %21 : vector<2xf32> to vector<2x1xf32>
    %23 = vector.broadcast %22 : vector<2x1xf32> to vector<2x8xf32>
    %24 = arith.subf %20, %23 : vector<2x8xf32>
    %25 = math.exp %24 : vector<2x8xf32>
    %cst_14 = arith.constant dense<0.000000e+00> : vector<2xf32>
    %26 = vector.multi_reduction <add>, %25, %cst_14 [1] : vector<2x8xf32> to vector<2xf32>
    %27 = vector.shape_cast %26 : vector<2xf32> to vector<2x1xf32>
    %28 = vector.broadcast %27 : vector<2x1xf32> to vector<2x8xf32>
    %29 = arith.divf %25, %28 : vector<2x8xf32>
    %30 = vector.shape_cast %29 : vector<2x8xf32> to vector<2x8x1xf32>
    %31 = vector.broadcast %30 : vector<2x8x1xf32> to vector<2x8x32xf32>
    %32 = arith.mulf %1, %31 : vector<2x8x32xf32>
    %cst_15 = arith.constant dense<0.000000e+00> : vector<2x32xf32>
    %33 = vector.multi_reduction <add>, %32, %cst_15 [1] : vector<2x8x32xf32> to vector<2x32xf32>
    %c0_16 = arith.constant 0 : index
    %c0_17 = arith.constant 0 : index
    %34 = vector.load %arg6[%c0_16, %c0_17] : memref<2x32xf32, #tpu.memory_space<vmem>>, vector<2x32xf32>
    tpu.vector_store %arg6[%c0_16, %c0_17], %33 {strides = array<i32>} : memref<2x32xf32, #tpu.memory_space<vmem>>, vector<2x32xf32>,
    %c0_18 = arith.constant 0 : index
    %c0_19 = arith.constant 0 : index
    %35 = vector.load %arg7[%c0_18, %c0_19] : memref<2x8xf32, #tpu.memory_space<vmem>>, vector<2x8xf32>
    tpu.vector_store %arg7[%c0_18, %c0_19], %29 {strides = array<i32>} : memref<2x8xf32, #tpu.memory_space<vmem>>, vector<2x8xf32>,
    return
  }
  func.func @transform_0(%arg0: i32) -> (i32, i32, i32) {
    %c0_i32 = arith.constant 0 : i32
    %c0_i32_0 = arith.constant 0 : i32
    %c0_i32_1 = arith.constant 0 : i32
    return %arg0, %c0_i32, %c0_i32_0 : i32, i32, i32
  }
  func.func @transform_1(%arg0: i32) -> (i32, i32) {
    %c0_i32 = arith.constant 0 : i32
    %c0_i32_0 = arith.constant 0 : i32
    return %arg0, %c0_i32 : i32, i32
  }
  func.func @transform_2(%arg0: i32) -> (i32, i32) {
    %c0_i32 = arith.constant 0 : i32
    %c0_i32_0 = arith.constant 0 : i32
    %c0_i32_1 = arith.constant 0 : i32
    return %c0_i32, %c0_i32_0 : i32, i32
  }
  func.func @transform_3(%arg0: i32) -> (i32, i32) {
    %c0_i32 = arith.constant 0 : i32
    %c0_i32_0 = arith.constant 0 : i32
    %c0_i32_1 = arith.constant 0 : i32
    return %c0_i32, %c0_i32_0 : i32, i32
  }
  func.func @transform_4(%arg0: i32) -> (i32, i32) {
    %c0_i32 = arith.constant 0 : i32
    %c0_i32_0 = arith.constant 0 : i32
    %c0_i32_1 = arith.constant 0 : i32
    return %c0_i32, %c0_i32_0 : i32, i32
  }
  func.func @transform_5(%arg0: i32) -> (i32, i32) {
    %c0_i32 = arith.constant 0 : i32
    %c0_i32_0 = arith.constant 0 : i32
    return %arg0, %c0_i32 : i32, i32
  }
  func.func @transform_6(%arg0: i32) -> (i32, i32) {
    %c0_i32 = arith.constant 0 : i32
    %c0_i32_0 = arith.constant 0 : i32
    return %arg0, %c0_i32 : i32, i32
  }
}

</mosaic_0001>

<bundles_post_ra>
// kernel: tpu_custom_call.1
= control target key start
LH: loop header
LB: loop body
LE: loop exit
PB: predicated region body
PF: predicated region fallthrough
CT: control target
= control target key end

     0   :  { %12 = vsyncpa [#allocation3], 0  ;;  %vm38_vm0 = vcmask 261120   ;;  %s549_s0 = inlined_call_operand.vmem [shape: f32[2,8,32], index: 0, kind: input, shape index: {}]   ;;  %s550_s1 = inlined_call_operand.vmem [shape: f32[2,8], index: 1, kind: input, shape index: {}]   ;;  %s551_s2 = inlined_call_operand.vmem [shape: f32[32,16], index: 2, kind: input, shape index: {}]   ;;  %s552_s3 = inlined_call_operand.vmem [shape: f32[1,16], index: 3, kind: input, shape index: {}]   ;;  %s553_s4 = inlined_call_operand.vmem [shape: f32[1,16], index: 4, kind: input, shape index: {}]   ;;  %s554_s5 = inlined_call_operand.hbm [shape: f32[2,32], index: 5, kind: output, shape index: {0}]   ;;  %s555_s6 = inlined_call_operand.hbm [shape: f32[2,8], index: 6, kind: output, shape index: {1}]  }
   0x1   :  { %v27_v0 = vld [vmem:[%s551_s2] sm:$0xff]  ;;  %v28_v1 = vld [vmem:[%s551_s2 + $0x8] sm:$0xff]  ;;  %v29_v2 = vld [vmem:[%s551_s2 + $0x10] sm:$0xff] }
   0x2   :  { %v348_v3 = vpack.c.bf16 %v28_v1, %v27_v0  ;;  %v30_v4 = vld [vmem:[%s551_s2 + $0x18] sm:$0xff]  ;;  %v474_v5 = vld [vmem:[%s549_s0] sm:$0xff] }
   0x3   :  { %v352_v6 = vpack.c.bf16 %v30_v4, %v29_v2  ;;  %345 = vmatprep.mubr.msk.f32.mxu0 %vm38_vm0, %v474_v5 }
   0x4   :  { %13 = vsyncpa [#allocation5], 0  ;;  %349 = vmatprep.subr.bf16.mxu0 %v348_v3  ;;  %v481_v7 = vld [vmem:[%s549_s0 + $0x8] sm:$0xff]  ;;  %v139_v8 = vlaneseq  ;;  %v24_v11 = vld [vmem:[%s550_s1] sm:$0x3]  ;;  %vm131_vm1 = vcmask 130048  }
   0x5   :  { %351 = vmatpush3.bf16.msra.mxu0 %v348_v3  ;;  %v157_v15 = vsub.f32 1.0, %v24_v11  ;;  %v327_v20 = vld [vmem:[%s552_s3] ss:$0 sm:$0xff]  ;;  %v421_v33 = vmov 0   ;;  %vm196_vm2 = vcmask 1041409   ;;  %vm199_vm3 = vcmask 58368  }
   0x6   :  { %353 = vmatprep.subr.bf16.mxu0 %v352_v6  ;;  %v140_v9 = vshrl.u32 %v139_v8, 7  ;;  %v187_v10 = vand.u32 127, %v139_v8  ;;  %v330_v25 = vld [vmem:[%s553_s4] ss:$0 sm:$0xff]  ;;  %359 = vset.pattern.permute.xlu1 %v421_v33  ;;  %s422_s3 = smov [#allocation4]  }
   0x7   :  { %v158_v18 = vmul.f32 -1e+12, %v157_v15  ;;  %360 = vset.pattern.permute.xlu0 %v421_v33  ;;  %s315_s4 = sshll.u32 %s422_s3, 4  ;;  %s316_s4 = int_to_ptr.vmem [resolvable:$true] %s315_s4 }
   0x8   :  { %v488_v12 = vsub.s32 0, %v140_v9  ;;  %v490_v13 = vsub.s32 %v187_v10, %v140_v9  ;;  %v492_v14 = vsub.s32 1, %v140_v9  ;;  %s373_s12 = scalar_lea.vmem %s316_s4, 32  ;;  %p378_p1 = scmp.lt.s32.totalorder %s316_s4, %s316_s4 }
   0x9   :  { %355 = vmatpush3.bf16.msra.mxu0 %v352_v6  ;;  %p374_p0 = scmp.ne.s32.totalorder %s316_s4, %s373_s12  ;;  %p379_p2 = scmp.lt.s32.totalorder %s373_s12, %s373_s12 }
   0xa   :  { %v142_v16 = vrot.slane %v24_v11, %v488_v12  ;;  %v149_v17 = vrot.slane %v24_v11, %v492_v14  ;;  %v170_v19 = vrot.slane %v158_v18, %v492_v14  ;;  %v163_v32 = vrot.slane %v158_v18, %v488_v12 }
   0xb   :  { %p380_p3 = por %p379_p2, %p378_p1 }
   0xc   :  { %346 = vmatmul.mubr.msk.f32.vlgmr.msra.gmra.mrb[0].mxu0 %vm38_vm0, %v481_v7  ;;  %144 = vbcast.lane.b32.xlu1 %v142_v16, 256 }
   0xd   :  { %p381_p4 = pnand %p380_p3, %p374_p0 }
  0x10   :  { %151 = vbcast.lane.b32.xlu1 %v149_v17, 256 }
  0x14   :  { %172 = vbcast.lane.b32.xlu1 %v170_v19, 256 }
  0x7e   :  { %v145_v34 = vpop.permute.xlu1 %144 }
  0x82   :  { %v152_v36 = vpop.permute.xlu1 %151 }
  0x86   :  { %v173_v42 = vpop.permute.xlu1 %172 }
  0xdf   :  { %v347_v21 = vpop.f32.mrb[0].mxu0 }
  0xe0   :  { %v117_v22 = vadd.f32 %v347_v21, %v327_v20  ;;  %v111_v23 = vpop.f32.mrb[1].mxu0 }
  0xe1   :  { %v112_v24 = vadd.f32 %v327_v20, %v111_v23 }
  0xe2   :  { %361 = vtanh.f32 %v117_v22 }
  0xe3   :  { %363 = vtanh.f32 %v112_v24 }
  0xec   :  { %v362_v26 = vpop.eup %361 }
  0xed   :  { %v364_v27 = vpop.eup %363  ;;  %v130_v28 = vmul.f32 %v362_v26, %v330_v25 }
  0xee   :  { %v129_v30 = vmul.f32 %v364_v27, %v330_v25 }
  0xef   :  { %v135_v29 = vsel %vm131_vm1, %v130_v28, 0.0 }
  0xf0   :  { %136 = vadd.xlane.f32.xlu0 %v135_v29  ;;  %v132_v31 = vsel %vm131_vm1, %v129_v30, 0.0 }
  0xf4   :  { %133 = vadd.xlane.f32.xlu0 %v132_v31 }
 0x10a   :  { %165 = vbcast.lane.b32.xlu0 %v163_v32, 256 }
 0x17d   :  { %v137_v35 = vpop.xlane.xlu0 %136 }
 0x17e   :  { %v156_v40 = vmul.f32 %v152_v36, %v137_v35 }
 0x180   :  { %v177_v43 = vadd.f32 %v173_v42, %v156_v40 }
 0x181   :  { %v134_v37 = vpop.xlane.xlu0 %133 }
 0x182   :  { %v155_v38 = vmul.f32 %v145_v34, %v134_v37 }
 0x185   :  { %v166_v39 = vpop.permute.xlu0 %165 }
 0x186   :  { %v176_v41 = vadd.f32 %v166_v39, %v155_v38 }
 0x188   :  { %181 = vperm.xlu1 %359, %v176_v41  }
 0x18c   :  { %184 = vperm.xlu1 %359, %v177_v43  }
 0x207   :  { %v182_v44 = vpop.permute.xlu1 %181 }
 0x208   :  { %v191_v46 = vrot.slane %v182_v44, %v490_v13 }
 0x20b   :  { %v185_v45 = vpop.permute.xlu1 %184 }
 0x20c   :  { %v195_v47 = vrot.slane %v185_v45, %v490_v13 }
 0x20e   :  { %v197_v48 = vsel %vm196_vm2, %v195_v47, %v191_v46 }
 0x20f   :  { %v200_v49 = vsel %vm199_vm3, %v197_v48, -inf }
 0x210   :  { %201 = vmax.xlane.f32.xlu1 %v200_v49 }
 0x29d   :  { %v202_v50 = vpop.xlane.xlu1 %201 }
 0x29e   :  { %v207_v51 = vrot.slane %v202_v50, %v488_v12  ;;  %v211_v52 = vrot.slane %v202_v50, %v492_v14 }
 0x2a0   :  { %v214_v53 = vsub.f32 %v176_v41, %v207_v51  ;;  %v215_v54 = vsub.f32 %v177_v43, %v211_v52 }
 0x2a2   :  { %v216_v55 = vmul.f32 1.442695, %v214_v53  ;;  %v218_v56 = vmul.f32 1.442695, %v215_v54 }
 0x2a4   :  { %365 = vpow2.f32 %v216_v55 }
 0x2a5   :  { %367 = vpow2.f32 %v218_v56 }
 0x2ae   :  { %v366_v57 = vpop.eup %365 }
 0x2af   :  { %223 = vperm.xlu0 %360, %v366_v57   ;;  %v368_v58 = vpop.eup %367 }
 0x2b3   :  { %226 = vperm.xlu0 %360, %v368_v58  }
 0x32e   :  { %v224_v59 = vpop.permute.xlu0 %223 }
 0x32f   :  { %v231_v61 = vrot.slane %v224_v59, %v490_v13 }
 0x332   :  { %v227_v60 = vpop.permute.xlu0 %226 }
 0x333   :  { %v235_v62 = vrot.slane %v227_v60, %v490_v13 }
 0x335   :  { %v236_v63 = vsel %vm196_vm2, %v235_v62, %v231_v61 }
 0x336   :  { %v238_v0 = vsel %vm199_vm3, %v236_v63, 0.0 }
 0x337   :  { %239 = vadd.xlane.f32.xlu0 %v238_v0 }
 0x3c4   :  { %v240_v1 = vpop.xlane.xlu0 %239 }
 0x3c5   :  { %v245_v2 = vrot.slane %v240_v1, %v488_v12  ;;  %v249_v3 = vrot.slane %v240_v1, %v492_v14 }
 0x3c7   :  { %369 = vrcp.f32 %v245_v2 }
 0x3c8   :  { %371 = vrcp.f32 %v249_v3 }
 0x3d1   :  { %v370_v4 = vpop.eup %369 }
 0x3d2   :  { %v372_v6 = vpop.eup %371  ;;  %v253_v8 = vmul.f32 %v370_v4, %v366_v57 }
 0x3d3   :  { %v255_v9 = vmul.f32 %v372_v6, %v368_v58 }
 0x3d4   :  { %258 = vperm.xlu1 %359, %v253_v8  }
 0x3d5   :  { %263 = vperm.xlu0 %360, %v255_v9  }
 0x453   :  { %v259_v10 = vpop.permute.xlu1 %258 }
 0x454   :  { %v264_v11 = vpop.permute.xlu0 %263  ;;  %v266_v15 = vmul.f32 %v259_v10, %v474_v5  ;;  %v291_v16 = vrot.slane %v259_v10, %v490_v13 }
 0x455   :  { %v267_v12 = vmul.f32 %v264_v11, %v481_v7  ;;  %v295_v14 = vrot.slane %v264_v11, %v490_v13 }
 0x456   :  { %v268_v17 = vsel %vm38_vm0, %v266_v15, 0.0 }
 0x457   :  { %v275_v18 = vsel %vm38_vm0, %v267_v12, 0.0  ;;  %v269_v19 = vrot.slane %v268_v17, 4  ;;  %v296_v20 = vsel %vm196_vm2, %v295_v14, %v291_v16 }
 0x458   :  { %v276_v21 = vrot.slane %v275_v18, 4  ;;  %298 = vst.msk [vmem:[#allocation4] sm:$0x3] %vm199_vm3, %v296_v20 }
 0x459   :  { %v270_v22 = vadd.f32 %v269_v19, %v268_v17 }
 0x45a   :  { %384 = shalt.err (!%p381_p4)
}
 0x45b   :  { %s385_s15 = scalar_lea.hbm %s555_s6, 32 }
 0x45c   :  { %p386_p5 = scmp.ne.s32.totalorder %s555_s6, %s385_s15  ;;  %p389_p6 = scmp.lt.u32.totalorder %s385_s15, %s555_s6 }
 0x45e   :  { %p391_p7 = pnand %p389_p6, %p386_p5 }
 0x460   :  { %394 = shalt.err (!%p391_p7)
}
 0x461   :  { %318 = dma.vmem_to_hbm [thread:$0]  %s316_s4, 32, %s555_s6, [#allocation5]   ;;  %v277_v5 = vadd.f32 %v276_v21, %v275_v18  ;;  %v271_v7 = vrot.slane %v270_v22, 2  ;;  %vm286_vm4 = vcmask 254976  }
 0x462   :  { %s423_s22 = smov [#allocation2]  }
 0x463   :  { %v278_v13 = vrot.slane %v277_v5, 2  ;;  %v272_v23 = vadd.f32 %v271_v7, %v270_v22  ;;  %s305_s23 = sshll.u32 %s423_s22, 4  ;;  %s306_s23 = int_to_ptr.vmem [resolvable:$true] %s305_s23 }
 0x464   :  { %s395_s24 = scalar_lea.vmem %s306_s23, 32  ;;  %p400_p9 = scmp.lt.s32.totalorder %s306_s23, %s306_s23 }
 0x465   :  { %v279_v24 = vadd.f32 %v278_v13, %v277_v5  ;;  %v273_v25 = vrot.slane %v272_v23, 1  ;;  %p396_p8 = scmp.ne.s32.totalorder %s306_s23, %s395_s24  ;;  %p401_p10 = scmp.lt.s32.totalorder %s395_s24, %s395_s24 }
 0x467   :  { %v280_v26 = vrot.slane %v279_v24, 1  ;;  %v274_v27 = vadd.f32 %v273_v25, %v272_v23  ;;  %p402_p11 = por %p401_p10, %p400_p9 }
 0x469   :  { %v281_v28 = vadd.f32 %v280_v26, %v279_v24  ;;  %p403_p12 = pnand %p402_p11, %p396_p8 }
 0x46b   :  { %v284_v29 = vsel %vm196_vm2, %v281_v28, %v274_v27 }
 0x46c   :  { %287 = vst.msk [vmem:[#allocation2] sm:$0x3] %vm286_vm4, %v284_v29 }
 0x46d   :  { %406 = shalt.err (!%p403_p12)
}
 0x46e   :  { %s407_s26 = scalar_lea.hbm %s554_s5, 32 }
 0x46f   :  { %p408_p13 = scmp.ne.s32.totalorder %s554_s5, %s407_s26  ;;  %p411_p0 = scmp.lt.u32.totalorder %s407_s26, %s554_s5 }
 0x471   :  { %p413_p1 = pnand %p411_p0, %p408_p13 }
 0x473   :  { %416 = shalt.err (!%p413_p1)
}
 0x474   :  { %308 = dma.vmem_to_hbm [thread:$0]  %s306_s23, 32, %s554_s5, [#allocation3]  }
 0x475   :  { %417 = dma.done.wait [#allocation3], 32  }
 0x476   :  { %418 = vsyncadd [#allocation3], 4294967264 }
 0x477   :  { %419 = dma.done.wait [#allocation5], 32  }
 0x478   :  { %420 = vsyncadd [#allocation5], 4294967264 }
 0x479   :  { %325 = vsyncpa [#allocation3], 1 }
 0x47a   :  { %326 = vsyncpa [#allocation5], 1 }

</bundles_post_ra>
